<compile_context>
chip_gen: v6e
topology: v6e:2x2x1
jax: 0.10.0
libtpu: 0.0.40
codegen_flags: <defaults>
</compile_context>

<pallas_src>
import jax
import jax.numpy as jnp
import numpy as np
from jax.experimental import pallas as pl
from jax.experimental.pallas import tpu as pltpu


def _round_up(x, m):
    return ((x + m - 1) // m) * m


def _choose_tile(batch):
    """Batch-tile size: multiple of 128 (16 for tiny batches), >=2 tiles when batch>256
    (keeps both v7x TensorCores busy), and at most 1024 rows/tile (few grid steps on
    v6e/v5e)."""
    if batch <= 256:
        return _round_up(batch, 16)
    n_target = max(2, -(-batch // 1024))
    return _round_up(-(-batch // n_target), 128)


def _soft_q_kernel(x_ref, w1_ref, b1_ref, w2_ref, b2_ref, w3_ref, b3_ref, out_ref):
    # Layer 1: single K-padded MXU dot (low-precision operands, f32 accumulation),
    # bias + ReLU on the VPU in f32.
    h1 = jnp.dot(x_ref[...], w1_ref[...], preferred_element_type=jnp.float32) + b1_ref[...]
    h1 = jnp.maximum(h1, 0.0)

    # Layer 2: MXU dot (f32 accumulation), bias + ReLU in f32.
    h2 = jnp.dot(h1.astype(w2_ref.dtype), w2_ref[...],
                 preferred_element_type=jnp.float32) + b2_ref[...]
    h2 = jnp.maximum(h2, 0.0)

    # Layer 3 (256 -> 1), emitted lane-dense: contract w3 (1,256) with h2 (tm,256) over
    # the feature axis -> (1, tm) row, all in f32.  b3 is a scalar read from SMEM.
    q = jax.lax.dot_general(w3_ref[...], h2, (((1,), (1,)), ((), ())),
                            preferred_element_type=jnp.float32)
    out_ref[...] = (q + b3_ref[0, 0]).astype(out_ref.dtype)


def soft_q_forward(visual_feature, state, action, params, matmul_dtype=jnp.bfloat16):
    """params = (w1, b1, w2, b2, w3, b3); weights stored as (in, out), f32."""
    w1, b1, w2, b2, w3, b3 = params
    batch = visual_feature.shape[0]
    in_dim = w1.shape[0]
    h1_dim = w1.shape[1]
    h2_dim = w2.shape[1]

    # Fused concat: one lane-aligned low-precision slab.  The feature dim (44) is
    # zero-padded to a multiple of 128 and W1 gets matching zero rows, so the extra
    # columns contribute exactly nothing to layer 1.
    k_pad = _round_up(in_dim, 128)
    x = jnp.concatenate([visual_feature, state, action], axis=1).astype(matmul_dtype)
    if k_pad != in_dim:
        x = jnp.pad(x, ((0, 0), (0, k_pad - in_dim)))
    w1p = w1.astype(matmul_dtype)
    if k_pad != in_dim:
        w1p = jnp.pad(w1p, ((0, k_pad - in_dim), (0, 0)))
    w2b = w2.astype(matmul_dtype)
    b1f = b1.reshape(1, h1_dim).astype(jnp.float32)
    b2f = b2.reshape(1, h2_dim).astype(jnp.float32)
    w3r = w3.reshape(1, h2_dim).astype(jnp.float32)   # row vector for the final contraction
    b3s = b3.reshape(1, 1).astype(jnp.float32)        # scalar, lives in SMEM

    # Batch tiling without any wrapper-side jnp.pad: partial final blocks are handled by
    # the grid; garbage rows past `batch` are row-independent and sliced off below.
    tm = _choose_tile(batch)
    n_tiles = pl.cdiv(batch, tm)
    out_cols = n_tiles * tm                            # lane-dense, tile-aligned output row

    resident = lambda shape: pl.BlockSpec(shape, lambda i: (0, 0))

    dt_bytes = jnp.dtype(matmul_dtype).itemsize
    rows = out_cols                                    # rows the kernel actually computes
    flops = 2 * rows * (k_pad * h1_dim + h1_dim * h2_dim + h2_dim)
    bytes_accessed = (
        dt_bytes * (k_pad * h1_dim + h1_dim * h2_dim)  # weights (DMA'd once, resident)
        + 4 * (h1_dim + h2_dim + h2_dim + 1)           # f32 biases + w3 row
        + dt_bytes * batch * k_pad                     # activations
        + 4 * out_cols)                                # f32 output row

    out = pl.pallas_call(
        _soft_q_kernel,
        out_shape=jax.ShapeDtypeStruct((1, out_cols), jnp.float32),
        grid=(n_tiles,),
        in_specs=[
            pl.BlockSpec((tm, k_pad), lambda i: (i, 0)),        # x tiles (pipelined)
            resident((k_pad, h1_dim)),                          # W1 (K-padded, resident)
            resident((1, h1_dim)),                              # b1
            resident((h1_dim, h2_dim)),                         # W2
            resident((1, h2_dim)),                              # b2
            resident((1, h2_dim)),                              # w3 row
            pl.BlockSpec(memory_space=pltpu.MemorySpace.SMEM),  # b3 scalar
        ],
        out_specs=pl.BlockSpec((1, tm), lambda i: (0, i)),      # lane-dense output row
        compiler_params=pltpu.CompilerParams(
            dimension_semantics=("parallel",)),
        cost_estimate=pl.CostEstimate(
            flops=flops, transcendentals=0, bytes_accessed=bytes_accessed),
    )(x, w1p, b1f, w2b, b2f, w3r, b3s)

    return out[0, :batch].reshape(batch, 1)


def init_params(key, in_dim, hidden=(512, 256, 1)):
    """Deterministic init mimicking torch.nn.Linear default (uniform +/- 1/sqrt(fan_in))."""
    params = []
    c_in = in_dim
    for c_out in hidden:
        key, kw, kb = jax.random.split(key, 3)
        bound = 1.0 / np.sqrt(c_in)
        w = jax.random.uniform(kw, (c_in, c_out), jnp.float32, -bound, bound)
        b = jax.random.uniform(kb, (1, c_out), jnp.float32, -bound, bound)
        params += [w, b]
        c_in = c_out
    return tuple(params)


def _reference(visual_feature, state, action, params, matmul_dtype=jnp.bfloat16):
    # Same numerics as the kernel: low-precision matmul operands, f32 accumulation,
    # f32 elementwise, f32 final layer.
    w1, b1, w2, b2, w3, b3 = params
    x = jnp.concatenate([visual_feature, state, action], axis=1)
    h1 = jnp.maximum(
        jnp.dot(x.astype(matmul_dtype), w1.astype(matmul_dtype),
                preferred_element_type=jnp.float32) + b1, 0.0)
    h2 = jnp.maximum(
        jnp.dot(h1.astype(matmul_dtype), w2.astype(matmul_dtype),
                preferred_element_type=jnp.float32) + b2, 0.0)
    return jnp.dot(h2, w3, preferred_element_type=jnp.float32) + b3


if __name__ == "__main__":
    # Small, module-consistent shapes: batch=2, encoder.out_dim=32, state_dim=8, action_dim=4.
    batch, vis_dim, state_dim, action_dim = 2, 32, 8, 4
    in_dim = vis_dim + state_dim + action_dim

    key = jax.random.PRNGKey(0)
    key, kv, ks, ka, kp = jax.random.split(key, 5)
    visual_feature = jax.random.normal(kv, (batch, vis_dim), jnp.float32)
    state = jax.random.normal(ks, (batch, state_dim), jnp.float32)
    action = jax.random.uniform(ka, (batch, action_dim), jnp.float32, -1.0, 1.0)

    params = init_params(kp, in_dim)
    fwd = jax.jit(soft_q_forward)

    q = jax.block_until_ready(fwd(visual_feature, state, action, params))
    q_ref = _reference(visual_feature, state, action, params)
    np.testing.assert_allclose(np.asarray(q), np.asarray(q_ref), rtol=2e-3, atol=2e-3)

    # Exercise the multi-tile grid (2 tiles of 384) and the partial-final-block path.
    bb = 600
    key, kv2, ks2, ka2 = jax.random.split(key, 4)
    vf2 = jax.random.normal(kv2, (bb, vis_dim), jnp.float32)
    st2 = jax.random.normal(ks2, (bb, state_dim), jnp.float32)
    ac2 = jax.random.uniform(ka2, (bb, action_dim), jnp.float32, -1.0, 1.0)
    q2 = jax.block_until_ready(fwd(vf2, st2, ac2, params))
    q2_ref = _reference(vf2, st2, ac2, params)
    np.testing.assert_allclose(np.asarray(q2), np.asarray(q2_ref), rtol=2e-3, atol=2e-3)

    print("KERNEL_OK")
</pallas_src>

<mosaic_0001>
module attributes {stable_mosaic.version = 11 : i64} {
  func.func @_soft_q_kernel(%arg0: i32, %arg1: memref<16x128xbf16, #tpu.memory_space<vmem>>, %arg2: memref<128x512xbf16, #tpu.memory_space<vmem>>, %arg3: memref<1x512xf32, #tpu.memory_space<vmem>>, %arg4: memref<512x256xbf16, #tpu.memory_space<vmem>>, %arg5: memref<1x256xf32, #tpu.memory_space<vmem>>, %arg6: memref<1x256xf32, #tpu.memory_space<vmem>>, %arg7: memref<1x1xf32, #tpu.memory_space<smem>>, %arg8: memref<1x16xf32, #tpu.memory_space<vmem>>) attributes {dimension_semantics = [#tpu.dimension_semantics<parallel>], iteration_bounds = array<i64: 1>, scalar_prefetch = 0 : i64, scratch_operands = 0 : i64, tpu.core_type = #tpu.core_type<tc>, window_params = [{transform_indices = @transform_0, window_bounds = array<i64: 16, 128>}, {pipeline_mode = #tpu.pipeline_mode<synchronous>, transform_indices = @transform_1, window_bounds = array<i64: 128, 512>}, {pipeline_mode = #tpu.pipeline_mode<synchronous>, transform_indices = @transform_2, window_bounds = array<i64: 1, 512>}, {pipeline_mode = #tpu.pipeline_mode<synchronous>, transform_indices = @transform_3, window_bounds = array<i64: 512, 256>}, {pipeline_mode = #tpu.pipeline_mode<synchronous>, transform_indices = @transform_4, window_bounds = array<i64: 1, 256>}, {pipeline_mode = #tpu.pipeline_mode<synchronous>, transform_indices = @transform_5, window_bounds = array<i64: 1, 256>}, {transform_indices = @transform_6, window_bounds = array<i64: 1, 1>}, {transform_indices = @transform_7, window_bounds = array<i64: 1, 16>}]} {
    %c0 = arith.constant 0 : index
    %c0_0 = arith.constant 0 : index
    %0 = vector.load %arg1[%c0, %c0_0] : memref<16x128xbf16, #tpu.memory_space<vmem>>, vector<16x128xbf16>
    %c0_1 = arith.constant 0 : index
    %c0_2 = arith.constant 0 : index
    %1 = vector.load %arg2[%c0_1, %c0_2] : memref<128x512xbf16, #tpu.memory_space<vmem>>, vector<128x512xbf16>
    %cst = arith.constant dense<0.000000e+00> : vector<16x512xf32>
    %2 = tpu.matmul %0, %1, %cst {dimension_numbers = #tpu.dot_dimension_numbers<[1], [0], [0], [1], [0, 0, 1, 1], [], []>} : vector<16x128xbf16>, vector<128x512xbf16>, vector<16x512xf32> -> vector<16x512xf32>
    %c0_3 = arith.constant 0 : index
    %c0_4 = arith.constant 0 : index
    %3 = vector.load %arg3[%c0_3, %c0_4] : memref<1x512xf32, #tpu.memory_space<vmem>>, vector<1x512xf32>
    %4 = vector.broadcast %3 : vector<1x512xf32> to vector<16x512xf32>
    %5 = arith.addf %2, %4 : vector<16x512xf32>
    %cst_5 = arith.constant 0.000000e+00 : f32
    %6 = vector.broadcast %cst_5 : f32 to vector<16x512xf32>
    %7 = arith.maximumf %5, %6 : vector<16x512xf32>
    %8 = arith.truncf %7 : vector<16x512xf32> to vector<16x512xbf16>
    %c0_6 = arith.constant 0 : index
    %c0_7 = arith.constant 0 : index
    %9 = vector.load %arg4[%c0_6, %c0_7] : memref<512x256xbf16, #tpu.memory_space<vmem>>, vector<512x256xbf16>
    %cst_8 = arith.constant dense<0.000000e+00> : vector<16x256xf32>
    %10 = tpu.matmul %8, %9, %cst_8 {dimension_numbers = #tpu.dot_dimension_numbers<[1], [0], [0], [1], [0, 0, 1, 1], [], []>} : vector<16x512xbf16>, vector<512x256xbf16>, vector<16x256xf32> -> vector<16x256xf32>
    %c0_9 = arith.constant 0 : index
    %c0_10 = arith.constant 0 : index
    %11 = vector.load %arg5[%c0_9, %c0_10] : memref<1x256xf32, #tpu.memory_space<vmem>>, vector<1x256xf32>
    %12 = vector.broadcast %11 : vector<1x256xf32> to vector<16x256xf32>
    %13 = arith.addf %10, %12 : vector<16x256xf32>
    %cst_11 = arith.constant 0.000000e+00 : f32
    %14 = vector.broadcast %cst_11 : f32 to vector<16x256xf32>
    %15 = arith.maximumf %13, %14 : vector<16x256xf32>
    %c0_12 = arith.constant 0 : index
    %c0_13 = arith.constant 0 : index
    %16 = vector.load %arg6[%c0_12, %c0_13] : memref<1x256xf32, #tpu.memory_space<vmem>>, vector<1x256xf32>
    %cst_14 = arith.constant dense<0.000000e+00> : vector<1x16xf32>
    %17 = tpu.matmul %16, %15, %cst_14 {dimension_numbers = #tpu.dot_dimension_numbers<[1], [1], [0], [0], [0, 0, 1, 0], [], []>} : vector<1x256xf32>, vector<16x256xf32>, vector<1x16xf32> -> vector<1x16xf32>
    %c0_15 = arith.constant 0 : index
    %c0_16 = arith.constant 0 : index
    %18 = memref.load %arg7[%c0_15, %c0_16] : memref<1x1xf32, #tpu.memory_space<smem>>
    %19 = vector.broadcast %18 : f32 to vector<1x16xf32>
    %20 = arith.addf %17, %19 : vector<1x16xf32>
    %c0_17 = arith.constant 0 : index
    %c0_18 = arith.constant 0 : index
    %21 = vector.load %arg8[%c0_17, %c0_18] : memref<1x16xf32, #tpu.memory_space<vmem>>, vector<1x16xf32>
    tpu.vector_store %arg8[%c0_17, %c0_18], %20 {strides = array<i32>} : memref<1x16xf32, #tpu.memory_space<vmem>>, vector<1x16xf32>,
    return
  }
  func.func @transform_0(%arg0: i32) -> (i32, i32) {
    %c0_i32 = arith.constant 0 : i32
    %c0_i32_0 = arith.constant 0 : i32
    return %arg0, %c0_i32 : i32, i32
  }
  func.func @transform_1(%arg0: i32) -> (i32, i32) {
    %c0_i32 = arith.constant 0 : i32
    %c0_i32_0 = arith.constant 0 : i32
    %c0_i32_1 = arith.constant 0 : i32
    return %c0_i32, %c0_i32_0 : i32, i32
  }
  func.func @transform_2(%arg0: i32) -> (i32, i32) {
    %c0_i32 = arith.constant 0 : i32
    %c0_i32_0 = arith.constant 0 : i32
    %c0_i32_1 = arith.constant 0 : i32
    return %c0_i32, %c0_i32_0 : i32, i32
  }
  func.func @transform_3(%arg0: i32) -> (i32, i32) {
    %c0_i32 = arith.constant 0 : i32
    %c0_i32_0 = arith.constant 0 : i32
    %c0_i32_1 = arith.constant 0 : i32
    return %c0_i32, %c0_i32_0 : i32, i32
  }
  func.func @transform_4(%arg0: i32) -> (i32, i32) {
    %c0_i32 = arith.constant 0 : i32
    %c0_i32_0 = arith.constant 0 : i32
    %c0_i32_1 = arith.constant 0 : i32
    return %c0_i32, %c0_i32_0 : i32, i32
  }
  func.func @transform_5(%arg0: i32) -> (i32, i32) {
    %c0_i32 = arith.constant 0 : i32
    %c0_i32_0 = arith.constant 0 : i32
    %c0_i32_1 = arith.constant 0 : i32
    return %c0_i32, %c0_i32_0 : i32, i32
  }
  func.func @transform_6(%arg0: i32) -> (i32, i32) {
    %c0_i32 = arith.constant 0 : i32
    %c0_i32_0 = arith.constant 0 : i32
    %c0_i32_1 = arith.constant 0 : i32
    return %c0_i32, %c0_i32_0 : i32, i32
  }
  func.func @transform_7(%arg0: i32) -> (i32, i32) {
    %c0_i32 = arith.constant 0 : i32
    %c0_i32_0 = arith.constant 0 : i32
    return %c0_i32, %arg0 : i32, i32
  }
}

</mosaic_0001>

<bundles_post_ra>
// kernel: soft_q_forward.1
= control target key start
LH: loop header
LB: loop body
LE: loop exit
PB: predicated region body
PF: predicated region fallthrough
CT: control target
= control target key end

     0   :  { %v1224_v1 = vmov 0   ;;  %v70_v18 = vlaneseq  ;;  %v1225_v19 = vmov 1966171168   ;;  %vm976_vm0 = vcmask 122880   ;;  %s1605_s1 = inlined_call_operand.vmem [shape: bf16[128,512], index: 1, kind: input, shape index: {}]   ;;  %s1606_s0 = inlined_call_operand.vmem [shape: bf16[2,128], index: 0, kind: input, shape index: {}]   ;;  %s1607_s3 = inlined_call_operand.vmem [shape: bf16[512,256], index: 3, kind: input, shape index: {}]   ;;  %s1608_s2 = inlined_call_operand.vmem [shape: f32[1,512], index: 2, kind: input, shape index: {}]   ;;  %s1609_s5 = inlined_call_operand.vmem [shape: f32[1,256], index: 5, kind: input, shape index: {}]   ;;  %s1610_s4 = inlined_call_operand.vmem [shape: f32[1,256], index: 4, kind: input, shape index: {}]   ;;  %s1611_s6 = inlined_call_operand.<no memory space> [shape: f32[1,1], index: 6, kind: input, shape index: {}]   ;;  %s1612_s7 = inlined_call_operand.vmem [shape: f32[1,16], index: 7, kind: output, shape index: {}]  }
   0x1   :  { %v1080_v0 = vld [vmem:[%s1605_s1 + $0xe4] ss:$16 sps:$4 sm:$0xff]   ;;  %340 = vmatprep.mubr.bf16.mxu0 %v1224_v1  ;;  %383 = vmatprep.mubr.bf16.mxu1 %v1224_v1  ;;  %v1082_v2 = vld [vmem:[%s1605_s1 + $0xec] ss:$16 sps:$4 sm:$0xff]   ;;  %v1084_v3 = vld [vmem:[%s1605_s1 + $0xe0] ss:$16 sps:$4 sm:$0xff]   ;;  %v103_v20 = vunpack.c.l.s4 %v1225_v19 }
   0x2   :  { %308 = vmatprep.subr.bf16.mxu0 %v1080_v0  ;;  %v1085_v4 = vld [vmem:[%s1605_s1 + $0xe8] ss:$16 sps:$4 sm:$0xff]   ;;  %351 = vmatprep.subr.bf16.mxu1 %v1082_v2  ;;  %v1086_v5 = vld [vmem:[%s1605_s1 + $0xc4] ss:$16 sps:$4 sm:$0xff]   ;;  %v1088_v6 = vld [vmem:[%s1605_s1 + $0xcc] ss:$16 sps:$4 sm:$0xff]  }
   0x3   :  { %309 = vmatpush1.bf16.msra.mxu0 %v1084_v3  ;;  %352 = vmatpush1.bf16.msra.mxu1 %v1085_v4  ;;  %v1090_v7 = vld [vmem:[%s1605_s1 + $0xc0] ss:$16 sps:$4 sm:$0xff]   ;;  %v1091_v8 = vld [vmem:[%s1605_s1 + $0xc8] ss:$16 sps:$4 sm:$0xff]   ;;  %v1092_v9 = vld [vmem:[%s1605_s1 + $0xa4] ss:$16 sps:$4 sm:$0xff]   ;;  %v104_v26 = vunpack.c.0.s8 %v103_v20 }
   0x4   :  { %310 = vmatprep.subr.bf16.mxu0 %v1086_v5  ;;  %353 = vmatprep.subr.bf16.mxu1 %v1088_v6  ;;  %v1094_v10 = vld [vmem:[%s1605_s1 + $0xac] ss:$16 sps:$4 sm:$0xff]   ;;  %v1096_v11 = vld [vmem:[%s1605_s1 + $0xa0] ss:$16 sps:$4 sm:$0xff]   ;;  %v1097_v12 = vld [vmem:[%s1605_s1 + $0xa8] ss:$16 sps:$4 sm:$0xff]  }
   0x5   :  { %v1098_v13 = vld [vmem:[%s1605_s1 + $0x84] ss:$16 sps:$4 sm:$0xff]   ;;  %v1100_v14 = vld [vmem:[%s1605_s1 + $0x8c] ss:$16 sps:$4 sm:$0xff]   ;;  %v1102_v15 = vld [vmem:[%s1605_s1 + $0x80] ss:$16 sps:$4 sm:$0xff]  }
   0x6   :  { %v1103_v16 = vld [vmem:[%s1605_s1 + $0x88] ss:$16 sps:$4 sm:$0xff]   ;;  %v1104_v17 = vld [vmem:[%s1605_s1 + $0x64] ss:$16 sps:$4 sm:$0xff]   ;;  %v1106_v21 = vld [vmem:[%s1605_s1 + $0x6c] ss:$16 sps:$4 sm:$0xff]  }
   0x7   :  { %311 = vmatpush1.bf16.msra.mxu0 %v1090_v7  ;;  %354 = vmatpush1.bf16.msra.mxu1 %v1091_v8  ;;  %v1108_v22 = vld [vmem:[%s1605_s1 + $0x60] ss:$16 sps:$4 sm:$0xff]   ;;  %v1109_v23 = vld [vmem:[%s1605_s1 + $0x68] ss:$16 sps:$4 sm:$0xff]   ;;  %v1110_v24 = vld [vmem:[%s1605_s1 + $0x44] ss:$16 sps:$4 sm:$0xff]  }
   0x8   :  { %312 = vmatprep.subr.bf16.mxu0 %v1092_v9  ;;  %355 = vmatprep.subr.bf16.mxu1 %v1094_v10  ;;  %v1329_v25 = vshrl.u32 %v70_v18, 7  ;;  %v1112_v27 = vld [vmem:[%s1605_s1 + $0x4c] ss:$16 sps:$4 sm:$0xff]   ;;  %v1114_v28 = vld [vmem:[%s1605_s1 + $0x40] ss:$16 sps:$4 sm:$0xff]  }
   0x9   :  { %v1115_v29 = vld [vmem:[%s1605_s1 + $0x48] ss:$16 sps:$4 sm:$0xff]   ;;  %v1116_v30 = vld [vmem:[%s1605_s1 + $0x24] ss:$16 sps:$4 sm:$0xff]   ;;  %v1118_v32 = vld [vmem:[%s1605_s1 + $0x2c] ss:$16 sps:$4 sm:$0xff]  }
   0xa   :  { %v107_v31 = vsub.s32 %v104_v26, %v1329_v25  ;;  %v28_v33 = vld [vmem:[%s1606_s0] sm:$0x1]  ;;  %v29_v34 = vld [vmem:[%s1606_s0 + $0x1] sm:$0x1]  ;;  %v1121_v36 = vld [vmem:[%s1605_s1 + $0x28] ss:$16 sps:$4 sm:$0xff]  }
   0xb   :  { %313 = vmatpush1.bf16.msra.mxu0 %v1096_v11  ;;  %356 = vmatpush1.bf16.msra.mxu1 %v1097_v12  ;;  %v1120_v35 = vld [vmem:[%s1605_s1 + $0x20] ss:$16 sps:$4 sm:$0xff]   ;;  %v32_v39 = vld [vmem:[%s1606_s0 + $0x4] sm:$0x1]  ;;  %v98_v40 = vcombine.low %v28_v33, %v29_v34  ;;  %v33_v41 = vld [vmem:[%s1606_s0 + $0x5] sm:$0x1] }
   0xc   :  { %314 = vmatprep.subr.bf16.mxu0 %v1098_v13  ;;  %357 = vmatprep.subr.bf16.mxu1 %v1100_v14  ;;  %v30_v37 = vld [vmem:[%s1606_s0 + $0x2] sm:$0x1]  ;;  %v31_v38 = vld [vmem:[%s1606_s0 + $0x3] sm:$0x1]  ;;  %v34_v42 = vld [vmem:[%s1606_s0 + $0x6] sm:$0x1]  ;;  %v100_v46 = vcombine.low %v32_v39, %v33_v41 }
   0xd   :  { %v35_v43 = vld [vmem:[%s1606_s0 + $0x7] sm:$0x1]  ;;  %v99_v44 = vcombine.low %v30_v37, %v31_v38  ;;  %v108_v48 = vrot.slane %v98_v40, %v107_v31  ;;  %v1124_v49 = vld [vmem:[%s1605_s1 + $0xc] ss:$16 sps:$4 sm:$0xff]   ;;  %v1126_v53 = vld [vmem:[%s1605_s1] ss:$16 sps:$4 sm:$0xff]  }
   0xe   :  { %v1122_v45 = vld [vmem:[%s1605_s1 + $0x4] ss:$16 sps:$4 sm:$0xff]   ;;  %v101_v47 = vcombine.low %v34_v42, %v35_v43  ;;  %v122_v51 = vrot.slane %v100_v46, %v107_v31  ;;  %v1127_v54 = vld [vmem:[%s1605_s1 + $0x8] ss:$16 sps:$4 sm:$0xff]  }
   0xf   :  { %315 = vmatpush1.bf16.msra.mxu0 %v1102_v15  ;;  %358 = vmatpush1.bf16.msra.mxu1 %v1103_v16  ;;  %v115_v50 = vrot.slane %v99_v44, %v107_v31  ;;  %v1130_v57 = vld [vmem:[%s1607_s3 + $0x74] ss:$8 sps:$4 sm:$0xff]   ;;  %v1128_v61 = vld [vmem:[%s1607_s3 + $0x70] ss:$8 sps:$4 sm:$0xff]   ;;  %v1136_v0 = vld [vmem:[%s1607_s3 + $0x64] ss:$8 sps:$4 sm:$0xff]  }
  0x10   :  { %316 = vmatprep.subr.bf16.mxu0 %v1104_v17  ;;  %359 = vmatprep.subr.bf16.mxu1 %v1106_v21  ;;  %v129_v52 = vrot.slane %v101_v47, %v107_v31  ;;  %v1133_v59 = vld [vmem:[%s1607_s3 + $0x174] ss:$8 sps:$4 sm:$0xff]   ;;  %v1131_v62 = vld [vmem:[%s1607_s3 + $0x170] ss:$8 sps:$4 sm:$0xff]   ;;  %v1139_v1 = vld [vmem:[%s1607_s3 + $0x164] ss:$8 sps:$4 sm:$0xff]  }
  0x11   :  { %v130_v55 = vcombine.low %v108_v48, %v115_v50  ;;  %v1134_v2 = vld [vmem:[%s1607_s3 + $0x60] ss:$8 sps:$4 sm:$0xff]   ;;  %v1142_v4 = vld [vmem:[%s1607_s3 + $0x54] ss:$8 sps:$4 sm:$0xff]   ;;  %v1140_v6 = vld [vmem:[%s1607_s3 + $0x50] ss:$8 sps:$4 sm:$0xff]  }
  0x12   :  { %v131_v56 = vcombine.low %v122_v51, %v129_v52  ;;  %v1137_v3 = vld [vmem:[%s1607_s3 + $0x160] ss:$8 sps:$4 sm:$0xff]   ;;  %v1145_v5 = vld [vmem:[%s1607_s3 + $0x154] ss:$8 sps:$4 sm:$0xff]   ;;  %v1143_v7 = vld [vmem:[%s1607_s3 + $0x150] ss:$8 sps:$4 sm:$0xff]  }
  0x13   :  { %317 = vmatpush1.bf16.msra.mxu0 %v1108_v22  ;;  %360 = vmatpush1.bf16.msra.mxu1 %v1109_v23  ;;  %v138_v58 = vrot.slane %v130_v55, %v107_v31  ;;  %v1148_v8 = vld [vmem:[%s1607_s3 + $0x44] ss:$8 sps:$4 sm:$0xff]   ;;  %v1146_v10 = vld [vmem:[%s1607_s3 + $0x40] ss:$8 sps:$4 sm:$0xff]   ;;  %v1154_v12 = vld [vmem:[%s1607_s3 + $0x34] ss:$8 sps:$4 sm:$0xff]  }
  0x14   :  { %318 = vmatprep.subr.bf16.mxu0 %v1110_v24  ;;  %361 = vmatprep.subr.bf16.mxu1 %v1112_v27  ;;  %v145_v60 = vrot.slane %v131_v56, %v107_v31  ;;  %v1151_v9 = vld [vmem:[%s1607_s3 + $0x144] ss:$8 sps:$4 sm:$0xff]   ;;  %v1149_v11 = vld [vmem:[%s1607_s3 + $0x140] ss:$8 sps:$4 sm:$0xff]   ;;  %v1157_v13 = vld [vmem:[%s1607_s3 + $0x134] ss:$8 sps:$4 sm:$0xff]  }
  0x15   :  { %v1152_v14 = vld [vmem:[%s1607_s3 + $0x30] ss:$8 sps:$4 sm:$0xff]   ;;  %v1160_v16 = vld [vmem:[%s1607_s3 + $0x24] ss:$8 sps:$4 sm:$0xff]   ;;  %v1158_v18 = vld [vmem:[%s1607_s3 + $0x20] ss:$8 sps:$4 sm:$0xff]  }
  0x16   :  { %v146_v63 = vcombine.low %v138_v58, %v145_v60  ;;  %v1155_v15 = vld [vmem:[%s1607_s3 + $0x130] ss:$8 sps:$4 sm:$0xff]   ;;  %v1163_v17 = vld [vmem:[%s1607_s3 + $0x124] ss:$8 sps:$4 sm:$0xff]   ;;  %v1161_v19 = vld [vmem:[%s1607_s3 + $0x120] ss:$8 sps:$4 sm:$0xff]  }
  0x17   :  { %319 = vmatpush1.bf16.msra.mxu0 %v1114_v28  ;;  %362 = vmatpush1.bf16.msra.mxu1 %v1115_v29  ;;  %v1166_v20 = vld [vmem:[%s1607_s3 + $0x14] ss:$8 sps:$4 sm:$0xff]   ;;  %v1164_v22 = vld [vmem:[%s1607_s3 + $0x10] ss:$8 sps:$4 sm:$0xff]   ;;  %v1172_v24 = vld [vmem:[%s1607_s3 + $0x4] ss:$8 sps:$4 sm:$0xff]  }
  0x18   :  { %320 = vmatprep.subr.bf16.mxu0 %v1116_v30  ;;  %363 = vmatprep.subr.bf16.mxu1 %v1118_v32  ;;  %v1169_v21 = vld [vmem:[%s1607_s3 + $0x114] ss:$8 sps:$4 sm:$0xff]   ;;  %v1167_v23 = vld [vmem:[%s1607_s3 + $0x110] ss:$8 sps:$4 sm:$0xff]   ;;  %v1175_v26 = vld [vmem:[%s1607_s3 + $0x104] ss:$8 sps:$4 sm:$0xff]  }
  0x19   :  { %v1170_v27 = vld [vmem:[%s1607_s3] ss:$8 sps:$4 sm:$0xff]   ;;  %v1178_v29 = vld [vmem:[%s1607_s3 + $0xf4] ss:$8 sps:$4 sm:$0xff]   ;;  %v1176_v31 = vld [vmem:[%s1607_s3 + $0xf0] ss:$8 sps:$4 sm:$0xff]  }
  0x1a   :  { %v1173_v28 = vld [vmem:[%s1607_s3 + $0x100] ss:$8 sps:$4 sm:$0xff]   ;;  %v1181_v30 = vld [vmem:[%s1607_s3 + $0x1f4] ss:$8 sps:$4 sm:$0xff]   ;;  %v1179_v32 = vld [vmem:[%s1607_s3 + $0x1f0] ss:$8 sps:$4 sm:$0xff]  }
  0x1b   :  { %321 = vmatpush1.bf16.msra.mxu0 %v1120_v35  ;;  %364 = vmatpush1.bf16.msra.mxu1 %v1121_v36  ;;  %v1184_v33 = vld [vmem:[%s1607_s3 + $0xe4] ss:$8 sps:$4 sm:$0xff]   ;;  %v1182_v35 = vld [vmem:[%s1607_s3 + $0xe0] ss:$8 sps:$4 sm:$0xff]   ;;  %v1190_v37 = vld [vmem:[%s1607_s3 + $0xd4] ss:$8 sps:$4 sm:$0xff]  }
  0x1c   :  { %322 = vmatprep.subr.bf16.mxu0 %v1122_v45  ;;  %365 = vmatprep.subr.bf16.mxu1 %v1124_v49  ;;  %v1187_v34 = vld [vmem:[%s1607_s3 + $0x1e4] ss:$8 sps:$4 sm:$0xff]   ;;  %v1185_v36 = vld [vmem:[%s1607_s3 + $0x1e0] ss:$8 sps:$4 sm:$0xff]   ;;  %v1193_v38 = vld [vmem:[%s1607_s3 + $0x1d4] ss:$8 sps:$4 sm:$0xff]  }
  0x1d   :  { %v1188_v39 = vld [vmem:[%s1607_s3 + $0xd0] ss:$8 sps:$4 sm:$0xff]   ;;  %v1196_v41 = vld [vmem:[%s1607_s3 + $0xc4] ss:$8 sps:$4 sm:$0xff]   ;;  %v1194_v43 = vld [vmem:[%s1607_s3 + $0xc0] ss:$8 sps:$4 sm:$0xff]  }
  0x1e   :  { %v1191_v40 = vld [vmem:[%s1607_s3 + $0x1d0] ss:$8 sps:$4 sm:$0xff]   ;;  %v1199_v42 = vld [vmem:[%s1607_s3 + $0x1c4] ss:$8 sps:$4 sm:$0xff]   ;;  %v1197_v44 = vld [vmem:[%s1607_s3 + $0x1c0] ss:$8 sps:$4 sm:$0xff]  }
  0x1f   :  { %323 = vmatpush1.bf16.msra.mxu0 %v1126_v53  ;;  %366 = vmatpush1.bf16.msra.mxu1 %v1127_v54  ;;  %v1202_v45 = vld [vmem:[%s1607_s3 + $0xb4] ss:$8 sps:$4 sm:$0xff]   ;;  %v1200_v47 = vld [vmem:[%s1607_s3 + $0xb0] ss:$8 sps:$4 sm:$0xff]   ;;  %v1208_v49 = vld [vmem:[%s1607_s3 + $0xa4] ss:$8 sps:$4 sm:$0xff]  }
  0x20   :  { %802 = vmatprep.subr.bf16.mxu0 %v1130_v57  ;;  %845 = vmatprep.subr.bf16.mxu1 %v1133_v59  ;;  %v1205_v46 = vld [vmem:[%s1607_s3 + $0x1b4] ss:$8 sps:$4 sm:$0xff]   ;;  %v1203_v48 = vld [vmem:[%s1607_s3 + $0x1b0] ss:$8 sps:$4 sm:$0xff]   ;;  %v1211_v50 = vld [vmem:[%s1607_s3 + $0x1a4] ss:$8 sps:$4 sm:$0xff]  }
  0x21   :  { %v1206_v51 = vld [vmem:[%s1607_s3 + $0xa0] ss:$8 sps:$4 sm:$0xff]   ;;  %v1214_v53 = vld [vmem:[%s1607_s3 + $0x94] ss:$8 sps:$4 sm:$0xff]   ;;  %v1212_v55 = vld [vmem:[%s1607_s3 + $0x90] ss:$8 sps:$4 sm:$0xff]  }
  0x22   :  { %341 = vmatmul.mubr.bf16.vlgmr.msra.gmra.mxu0 %v146_v63  ;;  %384 = vmatmul.mubr.bf16.vlgmr.msra.gmra.mxu1 %v146_v63  ;;  %v1209_v52 = vld [vmem:[%s1607_s3 + $0x1a0] ss:$8 sps:$4 sm:$0xff]   ;;  %v1217_v54 = vld [vmem:[%s1607_s3 + $0x194] ss:$8 sps:$4 sm:$0xff]   ;;  %v1215_v56 = vld [vmem:[%s1607_s3 + $0x190] ss:$8 sps:$4 sm:$0xff]  }
  0x23   :  { %803 = vmatpush1.bf16.msra.mxu0 %v1128_v61  ;;  %846 = vmatpush1.bf16.msra.mxu1 %v1131_v62  ;;  %v1220_v57 = vld [vmem:[%s1607_s3 + $0x84] ss:$8 sps:$4 sm:$0xff]   ;;  %v1218_v59 = vld [vmem:[%s1607_s3 + $0x80] ss:$8 sps:$4 sm:$0xff]   ;;  %v76_v61 = vsub.s32 1, %v1329_v25  ;;  %v84_v62 = vsub.s32 3, %v1329_v25 }
  0x24   :  { %804 = vmatprep.subr.bf16.mxu0 %v1136_v0  ;;  %847 = vmatprep.subr.bf16.mxu1 %v1139_v1  ;;  %v1223_v58 = vld [vmem:[%s1607_s3 + $0x184] ss:$8 sps:$4 sm:$0xff]   ;;  %v1221_v60 = vld [vmem:[%s1607_s3 + $0x180] ss:$8 sps:$4 sm:$0xff]   ;;  %v1584_v63 = vsub.s32 0, %v1329_v25  ;;  %v80_v0 = vsub.s32 2, %v1329_v25 }
  0x25   :  { %v68_v1 = vld [vmem:[%s1608_s2] sm:$0xf] }
  0x27   :  { %805 = vmatpush1.bf16.msra.mxu0 %v1134_v2  ;;  %848 = vmatpush1.bf16.msra.mxu1 %v1137_v3 }
  0x28   :  { %806 = vmatprep.subr.bf16.mxu0 %v1142_v4  ;;  %849 = vmatprep.subr.bf16.mxu1 %v1145_v5  ;;  %v77_v4 = vrot.slane %v68_v1, %v76_v61  ;;  %v85_v5 = vrot.slane %v68_v1, %v84_v62 }
  0x2b   :  { %807 = vmatpush1.bf16.msra.mxu0 %v1140_v6  ;;  %850 = vmatpush1.bf16.msra.mxu1 %v1143_v7  ;;  %v73_v6 = vrot.slane %v68_v1, %v1584_v63  ;;  %v81_v7 = vrot.slane %v68_v1, %v80_v0 }
  0x2c   :  { %808 = vmatprep.subr.bf16.mxu0 %v1148_v8  ;;  %851 = vmatprep.subr.bf16.mxu1 %v1151_v9 }
  0x2f   :  { %809 = vmatpush1.bf16.msra.mxu0 %v1146_v10  ;;  %852 = vmatpush1.bf16.msra.mxu1 %v1149_v11 }
  0x30   :  { %810 = vmatprep.subr.bf16.mxu0 %v1154_v12  ;;  %853 = vmatprep.subr.bf16.mxu1 %v1157_v13 }
  0x33   :  { %811 = vmatpush1.bf16.msra.mxu0 %v1152_v14  ;;  %854 = vmatpush1.bf16.msra.mxu1 %v1155_v15 }
  0x34   :  { %812 = vmatprep.subr.bf16.mxu0 %v1160_v16  ;;  %855 = vmatprep.subr.bf16.mxu1 %v1163_v17 }
  0x37   :  { %813 = vmatpush1.bf16.msra.mxu0 %v1158_v18  ;;  %856 = vmatpush1.bf16.msra.mxu1 %v1161_v19 }
  0x38   :  { %814 = vmatprep.subr.bf16.mxu0 %v1166_v20  ;;  %857 = vmatprep.subr.bf16.mxu1 %v1169_v21 }
  0x3b   :  { %815 = vmatpush1.bf16.msra.mxu0 %v1164_v22  ;;  %858 = vmatpush1.bf16.msra.mxu1 %v1167_v23 }
  0x3c   :  { %816 = vmatprep.subr.bf16.mxu0 %v1172_v24  ;;  %859 = vmatprep.subr.bf16.mxu1 %v1175_v26 }
  0x3f   :  { %817 = vmatpush1.bf16.msra.mxu0 %v1170_v27  ;;  %860 = vmatpush1.bf16.msra.mxu1 %v1173_v28 }
  0x40   :  { %818 = vmatprep.subr.bf16.mxu0 %v1178_v29  ;;  %861 = vmatprep.subr.bf16.mxu1 %v1181_v30 }
  0x43   :  { %819 = vmatpush2.bf16.msra.mxu0 %v1176_v31  ;;  %862 = vmatpush2.bf16.msra.mxu1 %v1179_v32 }
  0x44   :  { %820 = vmatprep.subr.bf16.mxu0 %v1184_v33  ;;  %863 = vmatprep.subr.bf16.mxu1 %v1187_v34  ;;  %v892_v34 = vld [vmem:[%s1609_s5] sm:$0x3] }
  0x47   :  { %821 = vmatpush2.bf16.msra.mxu0 %v1182_v35  ;;  %864 = vmatpush2.bf16.msra.mxu1 %v1185_v36  ;;  %v903_v35 = vrot.slane %v892_v34, %v76_v61  ;;  %v470_v36 = vld [vmem:[%s1610_s4] sm:$0x3] }
  0x48   :  { %822 = vmatprep.subr.bf16.mxu0 %v1190_v37  ;;  %865 = vmatprep.subr.bf16.mxu1 %v1193_v38 }
  0x4b   :  { %823 = vmatpush2.bf16.msra.mxu0 %v1188_v39  ;;  %866 = vmatpush2.bf16.msra.mxu1 %v1191_v40  ;;  %v479_v39 = vrot.slane %v470_v36, %v76_v61 }
  0x4c   :  { %824 = vmatprep.subr.bf16.mxu0 %v1196_v41  ;;  %867 = vmatprep.subr.bf16.mxu1 %v1199_v42  ;;  %v475_v42 = vrot.slane %v470_v36, %v1584_v63 }
  0x4f   :  { %825 = vmatpush2.bf16.msra.mxu0 %v1194_v43  ;;  %868 = vmatpush2.bf16.msra.mxu1 %v1197_v44 }
  0x50   :  { %826 = vmatprep.subr.bf16.mxu0 %v1202_v45  ;;  %869 = vmatprep.subr.bf16.mxu1 %v1205_v46 }
  0x53   :  { %827 = vmatpush2.bf16.msra.mxu0 %v1200_v47  ;;  %870 = vmatpush2.bf16.msra.mxu1 %v1203_v48 }
  0x54   :  { %828 = vmatprep.subr.bf16.mxu0 %v1208_v49  ;;  %871 = vmatprep.subr.bf16.mxu1 %v1211_v50 }
  0x57   :  { %829 = vmatpush2.bf16.msra.mxu0 %v1206_v51  ;;  %872 = vmatpush2.bf16.msra.mxu1 %v1209_v52 }
  0x58   :  { %830 = vmatprep.subr.bf16.mxu0 %v1214_v53  ;;  %873 = vmatprep.subr.bf16.mxu1 %v1217_v54 }
  0x5b   :  { %831 = vmatpush2.bf16.msra.mxu0 %v1212_v55  ;;  %874 = vmatpush2.bf16.msra.mxu1 %v1215_v56 }
  0x5c   :  { %832 = vmatprep.subr.bf16.mxu0 %v1220_v57  ;;  %875 = vmatprep.subr.bf16.mxu1 %v1223_v58 }
  0x5f   :  { %833 = vmatpush2.bf16.msra.mxu0 %v1218_v59  ;;  %876 = vmatpush2.bf16.msra.mxu1 %v1221_v60  ;;  %v899_v59 = vrot.slane %v892_v34, %v1584_v63  ;;  %v894_v60 = vstv %s1611_s6 }
  0xe2   :  { %v342_v2 = vpop.f32.mrf.mxu0  ;;  %v385_v3 = vpop.f32.mrf.mxu1 }
  0xe3   :  { %v343_v25 = vadd.f32 %v342_v2, %v73_v6  ;;  %v386_v16 = vadd.f32 %v385_v3, %v81_v7 }
  0xe4   :  { %v344_v8 = vpop.f32.mrf.mxu0  ;;  %v387_v9 = vpop.f32.mrf.mxu1 }
  0xe5   :  { %v345_v12 = vadd.f32 %v344_v8, %v77_v4  ;;  %v388_v13 = vadd.f32 %v387_v9, %v85_v5  ;;  %v394_v28 = vmax.f32 %v343_v25, 0.0  ;;  %v396_v29 = vmax.f32 %v386_v16, 0.0 }
  0xe6   :  { %v346_v10 = vpop.f32.mrf.mxu0  ;;  %v389_v11 = vpop.f32.mrf.mxu1 }
  0xe7   :  { %v347_v14 = vadd.f32 %v346_v10, %v73_v6  ;;  %v390_v15 = vadd.f32 %v389_v11, %v81_v7  ;;  %v395_v23 = vmax.f32 %v345_v12, 0.0  ;;  %v397_v24 = vmax.f32 %v388_v13, 0.0 }
  0xe8   :  { %v348_v17 = vpop.f32.mrf.mxu0  ;;  %v391_v18 = vpop.f32.mrf.mxu1 }
  0xe9   :  { %v349_v19 = vadd.f32 %v348_v17, %v77_v4  ;;  %v392_v20 = vadd.f32 %v391_v18, %v85_v5  ;;  %v398_v21 = vmax.f32 %v347_v14, 0.0  ;;  %v400_v22 = vmax.f32 %v390_v15, 0.0 }
  0xeb   :  { %v399_v26 = vmax.f32 %v349_v19, 0.0  ;;  %v401_v27 = vmax.f32 %v392_v20, 0.0  ;;  %v402_v32 = vpack.c.bf16 %v398_v21, %v394_v28  ;;  %v404_v33 = vpack.c.bf16 %v400_v22, %v396_v29 }
  0xed   :  { %v403_v30 = vpack.c.bf16 %v399_v26, %v395_v23  ;;  %v405_v31 = vpack.c.bf16 %v401_v27, %v397_v24 }
  0xef   :  { %834 = vmatprep.mubr.bf16.mxu0 %v403_v30  ;;  %877 = vmatprep.mubr.bf16.mxu1 %v405_v31 }
  0xf0   :  { %835 = vmatmul.mubr.bf16.vlgmr.msra.gmra.mxu0 %v402_v32  ;;  %878 = vmatmul.mubr.bf16.vlgmr.msra.gmra.mxu1 %v404_v33 }
  0xf1   :  { %970 = vmatprep.mubr.f32.mxu0 %v903_v35 }
 0x1b0   :  { %v836_v37 = vpop.f32.mrf.mxu0  ;;  %v879_v38 = vpop.f32.mrf.mxu1 }
 0x1b1   :  { %v837_v49 = vadd.f32 %v836_v37, %v475_v42 }
 0x1b2   :  { %v838_v40 = vpop.f32.mrf.mxu0  ;;  %v881_v41 = vpop.f32.mrf.mxu1 }
 0x1b3   :  { %v839_v45 = vadd.f32 %v838_v40, %v479_v39  ;;  %v880_v55 = vadd.f32 %v879_v38, %v837_v49 }
 0x1b4   :  { %v840_v43 = vpop.f32.mrf.mxu0  ;;  %v883_v44 = vpop.f32.mrf.mxu1 }
 0x1b5   :  { %v841_v46 = vadd.f32 %v840_v43, %v475_v42  ;;  %v882_v52 = vadd.f32 %v881_v41, %v839_v45  ;;  %v888_v58 = vmax.f32 %v880_v55, 0.0 }
 0x1b6   :  { %v842_v47 = vpop.f32.mrf.mxu0  ;;  %v885_v51 = vpop.f32.mrf.mxu1 }
 0x1b7   :  { %v843_v48 = vadd.f32 %v842_v47, %v479_v39  ;;  %v884_v50 = vadd.f32 %v883_v44, %v841_v46  ;;  %v889_v57 = vmax.f32 %v882_v52, 0.0 }
 0x1b9   :  { %v886_v53 = vadd.f32 %v885_v51, %v843_v48  ;;  %v890_v56 = vmax.f32 %v884_v50, 0.0 }
 0x1bb   :  { %v891_v54 = vmax.f32 %v886_v53, 0.0 }
 0x1bd   :  { %934 = vmatprep.subr.mxu0 %v891_v54 }
 0x1be   :  { %935 = vmatpush1.xpose.msra.mxu0 %v890_v56 }
 0x1bf   :  { %936 = vmatprep.subr.mxu0 %v889_v57 }
 0x1c2   :  { %937 = vmatpush1.xpose.msra.mxu0 %v888_v58 }
 0x1c5   :  { %971 = vmatmul.mubr.f32.vlgmr.msra.gmra.mxu0 %v899_v59 }
 0x285   :  { %v972_v61 = vpop.f32.mrf.mxu0 }
 0x286   :  { %v973_v62 = vadd.f32 %v972_v61, %v894_v60 }
 0x287   :  { %v974_v0 = vpop.f32.mrf.mxu0 }
 0x288   :  { %977 = vst.msk [vmem:[%s1612_s7] sm:$0x1] %vm976_vm0, %v973_v62 }

</bundles_post_ra>
